<compile_context>
chip_gen: v7x
topology: tpu7x:2x2x1
jax: 0.10.0
libtpu: 0.0.40
codegen_flags: <defaults>
</compile_context>

<pallas_src>
import numpy as np

import jax
import jax.numpy as jnp
from jax.experimental import pallas as pl
from jax.experimental.pallas import tpu as pltpu


# ----------------------------------------------------------------------------
# Fused kernel: sorted-edge scatter-add (one-hot matmul) + split-W1 2-layer MLP
# ----------------------------------------------------------------------------
def node_model_kernel(lut_ref, cnt_ref,                     # scalar prefetch (SMEM)
                      row_ref, edge_ref, x_ref,             # tiled inputs (VMEM)
                      w1x_ref, w1e_ref, b1_ref, w2_ref, b2_ref,
                      o_ref,                                 # output tile
                      agg_ref):                              # f32 accumulator scratch
    ni = pl.program_id(0)            # node tile
    ei = pl.program_id(1)            # local edge tile within this node tile
    tn = agg_ref.shape[0]

    # --- init accumulator at the first local edge tile (pattern P3) ----------
    @pl.when(ei == 0)
    def _():
        agg_ref[...] = jnp.zeros_like(agg_ref)

    # --- scatter-add this edge tile (skipped on padding/dummy steps) ---------
    @pl.when(ei < cnt_ref[ni])
    def _():
        te = row_ref.shape[1]
        base = ni * tn
        row_local = row_ref[...] - base                       # (1, te) int32
        node_iota = jax.lax.broadcasted_iota(jnp.int32, (tn, te), 0)
        onehot = (node_iota == row_local).astype(jnp.float32)  # exact 0/1
        # (tn, te) @ (te, De) -> native orientation, no transpose needed.
        agg_ref[...] += jnp.dot(onehot, edge_ref[...],
                                preferred_element_type=jnp.float32)

    # --- finalize: split-W1 MLP on the last local edge tile ------------------
    @pl.when(ei == pl.num_programs(1) - 1)
    def _():
        # cat([x, agg]) @ W1  ==  x @ W1x + agg @ W1e   (no concat materialized)
        h = jnp.dot(x_ref[...], w1x_ref[...], preferred_element_type=jnp.float32)
        h += jnp.dot(agg_ref[...], w1e_ref[...], preferred_element_type=jnp.float32)
        h = jnp.maximum(h + b1_ref[...], 0.0)
        y = jnp.dot(h, w2_ref[...], preferred_element_type=jnp.float32) + b2_ref[...]
        o_ref[...] = y.astype(o_ref.dtype)


def _round_up(v, m):
    return ((v + m - 1) // m) * m


def _pick_tiles(tn, te):
    """Default node/edge tile sizes and VMEM budget per TPU generation."""
    try:
        vmem_cap = pltpu.get_tpu_info().vmem_capacity_bytes
    except Exception:
        vmem_cap = 64 * 1024 * 1024
    if vmem_cap >= 96 * 1024 * 1024:      # v5e / v6e: 128 MiB physical VMEM
        tn_d, te_d, limit = 2048, 512, 96 * 1024 * 1024
    else:                                 # v7x: 64 MiB physical VMEM, 2 TCs
        tn_d, te_d, limit = 1024, 512, 48 * 1024 * 1024
    return (tn_d if tn is None else tn, te_d if te is None else te, limit)


def node_model_forward(params, x, edge_index, edge_attr, u=None, batch=None,
                       *, tn=None, te=None):
    """Pallas NodeModel forward.  u and batch are unused (as in PyTorch).

    The edge schedule (sort by row + per-node-tile edge-tile LUT) is computed
    host-side with concrete values, so call this eagerly (the pallas_call
    itself is compiled as usual).
    """
    del u, batch
    n, d_x = x.shape
    e, d_e = edge_attr.shape

    w1, b1, w2, b2 = params["w1"], params["b1"], params["w2"], params["b2"]
    d_h = w1.shape[1]
    d_o = w2.shape[1]

    # ---- tile sizes / VMEM budget --------------------------------------------
    tn, te, vmem_limit = _pick_tiles(tn, te)
    tn = min(tn, _round_up(n, 128))
    te = min(te, _round_up(e, 128))
    n_pad = _round_up(n, tn)
    e_pad = _round_up(e, te)
    n_tiles = n_pad // tn
    num_edge_tiles = e_pad // te          # real tiles; dummy tile index == this
    e_tot = e_pad + te                    # + one all-dummy edge tile

    # ---- feature dims padded to 128 lanes ------------------------------------
    d_xp = _round_up(d_x, 128)
    d_ep = _round_up(d_e, 128)
    d_hp = _round_up(d_h, 128)
    d_op = _round_up(d_o, 128)

    # ---- host-side edge schedule: sort by row, per-node-tile tile ranges -----
    row_np = np.asarray(jax.device_get(edge_index))[0].astype(np.int64)
    order_np = np.argsort(row_np, kind="stable")
    row_sorted = row_np[order_np]

    node_lo = np.searchsorted(row_sorted, np.arange(n_tiles) * tn, side="left")
    node_hi = np.searchsorted(row_sorted, (np.arange(n_tiles) + 1) * tn, side="left")
    tile_start = node_lo // te
    tile_end = np.where(node_hi > node_lo, -(-node_hi // te), tile_start)
    counts_np = (tile_end - tile_start).astype(np.int32)
    max_tiles = max(int(counts_np.max()) if counts_np.size else 0, 1)

    lut_np = np.full((n_tiles, max_tiles), num_edge_tiles, dtype=np.int32)
    for i in range(n_tiles):
        c = int(counts_np[i])
        if c:
            lut_np[i, :c] = np.arange(tile_start[i], tile_start[i] + c,
                                      dtype=np.int32)
    lut = jnp.asarray(lut_np.reshape(-1))          # flat: ni * max_tiles + ei
    counts = jnp.asarray(counts_np)

    # ---- padded device operands ----------------------------------------------
    row_p = np.full((1, e_tot), -1, dtype=np.int32)   # -1 never matches any node
    row_p[0, :e] = row_sorted
    row_p = jnp.asarray(row_p)

    ea_sorted = jnp.take(edge_attr, jnp.asarray(order_np, dtype=jnp.int32), axis=0)
    ea_p = jnp.pad(ea_sorted, ((0, e_tot - e), (0, d_ep - d_e)))
    xp = jnp.pad(x, ((0, n_pad - n), (0, d_xp - d_x)))

    w1x = jnp.pad(w1[:d_x], ((0, d_xp - d_x), (0, d_hp - d_h)))   # split-W1: x rows
    w1e = jnp.pad(w1[d_x:], ((0, d_ep - d_e), (0, d_hp - d_h)))   # split-W1: agg rows
    b1p = jnp.pad(b1, ((0, 0), (0, d_hp - d_h)))
    w2p = jnp.pad(w2, ((0, d_hp - d_h), (0, d_op - d_o)))
    b2p = jnp.pad(b2, ((0, 0), (0, d_op - d_o)))

    grid_spec = pltpu.PrefetchScalarGridSpec(
        num_scalar_prefetch=2,
        grid=(n_tiles, max_tiles),
        in_specs=[
            # row ids: lane-dense (1, te) block, data-dependent edge tile
            pl.BlockSpec((1, te),
                         lambda ni, ei, lut_r, cnt_r: (0, lut_r[ni * max_tiles + ei])),
            # edge_attr tile, same data-dependent edge tile
            pl.BlockSpec((te, d_ep),
                         lambda ni, ei, lut_r, cnt_r: (lut_r[ni * max_tiles + ei], 0)),
            # x tile (node-resident across the edge axis)
            pl.BlockSpec((tn, d_xp), lambda ni, ei, lut_r, cnt_r: (ni, 0)),
            # weights / biases (constant index -> resident)
            pl.BlockSpec((d_xp, d_hp), lambda ni, ei, lut_r, cnt_r: (0, 0)),
            pl.BlockSpec((d_ep, d_hp), lambda ni, ei, lut_r, cnt_r: (0, 0)),
            pl.BlockSpec((1, d_hp), lambda ni, ei, lut_r, cnt_r: (0, 0)),
            pl.BlockSpec((d_hp, d_op), lambda ni, ei, lut_r, cnt_r: (0, 0)),
            pl.BlockSpec((1, d_op), lambda ni, ei, lut_r, cnt_r: (0, 0)),
        ],
        out_specs=pl.BlockSpec((tn, d_op), lambda ni, ei, lut_r, cnt_r: (ni, 0)),
        scratch_shapes=[pltpu.VMEM((tn, d_ep), jnp.float32)],   # agg accumulator
    )

    out = pl.pallas_call(
        node_model_kernel,
        out_shape=jax.ShapeDtypeStruct((n_pad, d_op), x.dtype),
        grid_spec=grid_spec,
        compiler_params=pltpu.CompilerParams(
            dimension_semantics=("parallel", "arbitrary"),
            vmem_limit_bytes=vmem_limit,
        ),
    )(lut, counts, row_p, ea_p, xp, w1x, w1e, b1p, w2p, b2p)
    return out[:n, :d_o]


# ----------------------------------------------------------------------------
# Parameter construction (mirrors nn.Linear default init, (in, out) layout)
# ----------------------------------------------------------------------------
def init_node_model_params(key, node_in_dim, edge_out_dim, node_out_dim, hidden_dim):
    k1, k2, k3, k4 = jax.random.split(key, 4)
    din1 = node_in_dim + edge_out_dim
    bound1 = 1.0 / jnp.sqrt(jnp.float32(din1))
    bound2 = 1.0 / jnp.sqrt(jnp.float32(hidden_dim))
    return {
        "w1": jax.random.uniform(k1, (din1, hidden_dim), jnp.float32, -bound1, bound1),
        "b1": jax.random.uniform(k2, (1, hidden_dim), jnp.float32, -bound1, bound1),
        "w2": jax.random.uniform(k3, (hidden_dim, node_out_dim), jnp.float32, -bound2, bound2),
        "b2": jax.random.uniform(k4, (1, node_out_dim), jnp.float32, -bound2, bound2),
    }


# Pure-JAX reference (exact PyTorch semantics, f32)
def node_model_reference(params, x, edge_index, edge_attr):
    row = edge_index[0]
    agg = jnp.zeros((x.shape[0], edge_attr.shape[1]), edge_attr.dtype)
    agg = agg.at[row].add(edge_attr)
    h = jnp.concatenate([x, agg], axis=1)
    h = jnp.maximum(h @ params["w1"] + params["b1"], 0.0)
    return h @ params["w2"] + params["b2"]


# ----------------------------------------------------------------------------
# Demo
# ----------------------------------------------------------------------------
if __name__ == "__main__":
    key = jax.random.PRNGKey(0)
    k_param, k_x, k_ea, k_ei = jax.random.split(key, 4)

    num_nodes, num_edges = 24, 64
    node_in_dim, edge_out_dim, node_out_dim, hidden_dim = 8, 6, 4, 32

    params = init_node_model_params(k_param, node_in_dim, edge_out_dim,
                                    node_out_dim, hidden_dim)

    x = jax.random.normal(k_x, (num_nodes, node_in_dim), jnp.float32)
    edge_attr = jax.random.normal(k_ea, (num_edges, edge_out_dim), jnp.float32)
    edge_index = jax.random.randint(k_ei, (2, num_edges), 0, num_nodes, jnp.int32)
    u = None
    batch = jnp.zeros((num_nodes,), jnp.int32)

    # Called eagerly: the sorted-edge schedule is computed host-side; the
    # pallas_call itself is compiled for TPU as usual.
    out = node_model_forward(params, x, edge_index, edge_attr, u, batch)
    jax.block_until_ready(out)

    ref = node_model_reference(params, x, edge_index, edge_attr)

    assert out.shape == (num_nodes, node_out_dim), out.shape
    assert out.dtype == jnp.float32
    assert bool(jnp.all(jnp.isfinite(out)))
    # f32 data path end-to-end; remaining error comes only from MXU-internal
    # default matmul precision, so the tolerance is tightened vs the bf16 version.
    assert bool(jnp.allclose(out, ref, atol=3e-2, rtol=3e-2)), \
        float(jnp.max(jnp.abs(out - ref)))
    print("KERNEL_OK")
</pallas_src>

<mosaic_0001>
module attributes {stable_mosaic.version = 11 : i64} {
  func.func @node_model_kernel(%arg0: i32, %arg1: i32, %arg2: memref<1xi32, #tpu.memory_space<smem>>, %arg3: memref<1xi32, #tpu.memory_space<smem>>, %arg4: memref<1x128xi32, #tpu.memory_space<vmem>>, %arg5: memref<128x128xf32, #tpu.memory_space<vmem>>, %arg6: memref<128x128xf32, #tpu.memory_space<vmem>>, %arg7: memref<128x128xf32, #tpu.memory_space<vmem>>, %arg8: memref<128x128xf32, #tpu.memory_space<vmem>>, %arg9: memref<1x128xf32, #tpu.memory_space<vmem>>, %arg10: memref<128x128xf32, #tpu.memory_space<vmem>>, %arg11: memref<1x128xf32, #tpu.memory_space<vmem>>, %arg12: memref<128x128xf32, #tpu.memory_space<vmem>>, %arg13: memref<128x128xf32, #tpu.memory_space<vmem>>) attributes {dimension_semantics = [#tpu.dimension_semantics<parallel>, #tpu.dimension_semantics<arbitrary>], iteration_bounds = array<i64: 1, 1>, scalar_prefetch = 2 : i64, scratch_operands = 1 : i64, tpu.core_type = #tpu.core_type<tc>, window_params = [{transform_indices = @transform_0, window_bounds = array<i64: 1, 128>}, {transform_indices = @transform_1, window_bounds = array<i64: 128, 128>}, {transform_indices = @transform_2, window_bounds = array<i64: 128, 128>}, {pipeline_mode = #tpu.pipeline_mode<synchronous>, transform_indices = @transform_3, window_bounds = array<i64: 128, 128>}, {pipeline_mode = #tpu.pipeline_mode<synchronous>, transform_indices = @transform_4, window_bounds = array<i64: 128, 128>}, {pipeline_mode = #tpu.pipeline_mode<synchronous>, transform_indices = @transform_5, window_bounds = array<i64: 1, 128>}, {pipeline_mode = #tpu.pipeline_mode<synchronous>, transform_indices = @transform_6, window_bounds = array<i64: 128, 128>}, {pipeline_mode = #tpu.pipeline_mode<synchronous>, transform_indices = @transform_7, window_bounds = array<i64: 1, 128>}, {transform_indices = @transform_8, window_bounds = array<i64: 128, 128>}]} {
    %c0_i32 = arith.constant 0 : i32
    %0 = arith.cmpi eq, %arg1, %c0_i32 : i32
    %1 = arith.extui %0 : i1 to i32
    %c0_i32_0 = arith.constant 0 : i32
    %2 = arith.cmpi ne, %1, %c0_i32_0 : i32
    scf.if %2 {
      %cst = arith.constant 0.000000e+00 : f32
      %11 = vector.broadcast %cst : f32 to vector<128x128xf32>
      %c0 = arith.constant 0 : index
      %c0_4 = arith.constant 0 : index
      %12 = vector.load %arg13[%c0, %c0_4] : memref<128x128xf32, #tpu.memory_space<vmem>>, vector<128x128xf32>
      tpu.vector_store %arg13[%c0, %c0_4], %11 {strides = array<i32>} : memref<128x128xf32, #tpu.memory_space<vmem>>, vector<128x128xf32>,
    } else {
    }
    %3 = arith.index_cast %arg0 : i32 to index
    %4 = memref.load %arg3[%3] : memref<1xi32, #tpu.memory_space<smem>>
    %5 = arith.cmpi slt, %arg1, %4 : i32
    %6 = arith.extui %5 : i1 to i32
    %c0_i32_1 = arith.constant 0 : i32
    %7 = arith.cmpi ne, %6, %c0_i32_1 : i32
    scf.if %7 {
      %c128_i32 = arith.constant 128 : i32
      %11 = arith.muli %arg0, %c128_i32 : i32
      %c0 = arith.constant 0 : index
      %c0_4 = arith.constant 0 : index
      %12 = vector.load %arg4[%c0, %c0_4] : memref<1x128xi32, #tpu.memory_space<vmem>>, vector<1x128xi32>
      %13 = vector.broadcast %11 : i32 to vector<1x128xi32>
      %14 = arith.subi %12, %13 : vector<1x128xi32>
      %15 = tpu.iota {dimensions = array<i32: 0>} : vector<128x128xi32>
      %16 = vector.broadcast %14 : vector<1x128xi32> to vector<128x128xi32>
      %17 = arith.cmpi eq, %15, %16 : vector<128x128xi32>
      %18 = arith.extui %17 : vector<128x128xi1> to vector<128x128xi32>
      %19 = arith.sitofp %18 : vector<128x128xi32> to vector<128x128xf32>
      %c0_5 = arith.constant 0 : index
      %c0_6 = arith.constant 0 : index
      %20 = vector.load %arg13[%c0_5, %c0_6] : memref<128x128xf32, #tpu.memory_space<vmem>>, vector<128x128xf32>
      %c0_7 = arith.constant 0 : index
      %c0_8 = arith.constant 0 : index
      %21 = vector.load %arg5[%c0_7, %c0_8] : memref<128x128xf32, #tpu.memory_space<vmem>>, vector<128x128xf32>
      %cst = arith.constant dense<0.000000e+00> : vector<128x128xf32>
      %22 = tpu.matmul %19, %21, %cst {dimension_numbers = #tpu.dot_dimension_numbers<[1], [0], [0], [1], [0, 0, 1, 1], [], []>} : vector<128x128xf32>, vector<128x128xf32>, vector<128x128xf32> -> vector<128x128xf32>
      %23 = arith.addf %20, %22 : vector<128x128xf32>
      %c0_9 = arith.constant 0 : index
      %c0_10 = arith.constant 0 : index
      %24 = vector.load %arg13[%c0_9, %c0_10] : memref<128x128xf32, #tpu.memory_space<vmem>>, vector<128x128xf32>
      tpu.vector_store %arg13[%c0_9, %c0_10], %23 {strides = array<i32>} : memref<128x128xf32, #tpu.memory_space<vmem>>, vector<128x128xf32>,
    } else {
    }
    %c0_i32_2 = arith.constant 0 : i32
    %8 = arith.cmpi eq, %arg1, %c0_i32_2 : i32
    %9 = arith.extui %8 : i1 to i32
    %c0_i32_3 = arith.constant 0 : i32
    %10 = arith.cmpi ne, %9, %c0_i32_3 : i32
    scf.if %10 {
      %c0 = arith.constant 0 : index
      %c0_4 = arith.constant 0 : index
      %11 = vector.load %arg6[%c0, %c0_4] : memref<128x128xf32, #tpu.memory_space<vmem>>, vector<128x128xf32>
      %c0_5 = arith.constant 0 : index
      %c0_6 = arith.constant 0 : index
      %12 = vector.load %arg7[%c0_5, %c0_6] : memref<128x128xf32, #tpu.memory_space<vmem>>, vector<128x128xf32>
      %cst = arith.constant dense<0.000000e+00> : vector<128x128xf32>
      %13 = tpu.matmul %11, %12, %cst {dimension_numbers = #tpu.dot_dimension_numbers<[1], [0], [0], [1], [0, 0, 1, 1], [], []>} : vector<128x128xf32>, vector<128x128xf32>, vector<128x128xf32> -> vector<128x128xf32>
      %c0_7 = arith.constant 0 : index
      %c0_8 = arith.constant 0 : index
      %14 = vector.load %arg13[%c0_7, %c0_8] : memref<128x128xf32, #tpu.memory_space<vmem>>, vector<128x128xf32>
      %c0_9 = arith.constant 0 : index
      %c0_10 = arith.constant 0 : index
      %15 = vector.load %arg8[%c0_9, %c0_10] : memref<128x128xf32, #tpu.memory_space<vmem>>, vector<128x128xf32>
      %cst_11 = arith.constant dense<0.000000e+00> : vector<128x128xf32>
      %16 = tpu.matmul %14, %15, %cst_11 {dimension_numbers = #tpu.dot_dimension_numbers<[1], [0], [0], [1], [0, 0, 1, 1], [], []>} : vector<128x128xf32>, vector<128x128xf32>, vector<128x128xf32> -> vector<128x128xf32>
      %17 = arith.addf %13, %16 : vector<128x128xf32>
      %c0_12 = arith.constant 0 : index
      %c0_13 = arith.constant 0 : index
      %18 = vector.load %arg9[%c0_12, %c0_13] : memref<1x128xf32, #tpu.memory_space<vmem>>, vector<1x128xf32>
      %19 = vector.broadcast %18 : vector<1x128xf32> to vector<128x128xf32>
      %20 = arith.addf %17, %19 : vector<128x128xf32>
      %cst_14 = arith.constant 0.000000e+00 : f32
      %21 = vector.broadcast %cst_14 : f32 to vector<128x128xf32>
      %22 = arith.maximumf %20, %21 : vector<128x128xf32>
      %c0_15 = arith.constant 0 : index
      %c0_16 = arith.constant 0 : index
      %23 = vector.load %arg10[%c0_15, %c0_16] : memref<128x128xf32, #tpu.memory_space<vmem>>, vector<128x128xf32>
      %cst_17 = arith.constant dense<0.000000e+00> : vector<128x128xf32>
      %24 = tpu.matmul %22, %23, %cst_17 {dimension_numbers = #tpu.dot_dimension_numbers<[1], [0], [0], [1], [0, 0, 1, 1], [], []>} : vector<128x128xf32>, vector<128x128xf32>, vector<128x128xf32> -> vector<128x128xf32>
      %c0_18 = arith.constant 0 : index
      %c0_19 = arith.constant 0 : index
      %25 = vector.load %arg11[%c0_18, %c0_19] : memref<1x128xf32, #tpu.memory_space<vmem>>, vector<1x128xf32>
      %26 = vector.broadcast %25 : vector<1x128xf32> to vector<128x128xf32>
      %27 = arith.addf %24, %26 : vector<128x128xf32>
      %c0_20 = arith.constant 0 : index
      %c0_21 = arith.constant 0 : index
      %28 = vector.load %arg12[%c0_20, %c0_21] : memref<128x128xf32, #tpu.memory_space<vmem>>, vector<128x128xf32>
      tpu.vector_store %arg12[%c0_20, %c0_21], %27 {strides = array<i32>} : memref<128x128xf32, #tpu.memory_space<vmem>>, vector<128x128xf32>,
    } else {
    }
    return
  }
  func.func @transform_0(%arg0: i32, %arg1: i32, %arg2: memref<1xi32, #tpu.memory_space<smem>>, %arg3: memref<1xi32, #tpu.memory_space<smem>>) -> (i32, i32) {
    %c1_i32 = arith.constant 1 : i32
    %0 = arith.muli %arg0, %c1_i32 : i32
    %1 = arith.addi %0, %arg1 : i32
    %2 = arith.index_cast %1 : i32 to index
    %3 = memref.load %arg2[%2] : memref<1xi32, #tpu.memory_space<smem>>
    %c0_i32 = arith.constant 0 : i32
    %c0_i32_0 = arith.constant 0 : i32
    return %c0_i32, %3 : i32, i32
  }
  func.func @transform_1(%arg0: i32, %arg1: i32, %arg2: memref<1xi32, #tpu.memory_space<smem>>, %arg3: memref<1xi32, #tpu.memory_space<smem>>) -> (i32, i32) {
    %c1_i32 = arith.constant 1 : i32
    %0 = arith.muli %arg0, %c1_i32 : i32
    %1 = arith.addi %0, %arg1 : i32
    %2 = arith.index_cast %1 : i32 to index
    %3 = memref.load %arg2[%2] : memref<1xi32, #tpu.memory_space<smem>>
    %c0_i32 = arith.constant 0 : i32
    %c0_i32_0 = arith.constant 0 : i32
    return %3, %c0_i32 : i32, i32
  }
  func.func @transform_2(%arg0: i32, %arg1: i32, %arg2: memref<1xi32, #tpu.memory_space<smem>>, %arg3: memref<1xi32, #tpu.memory_space<smem>>) -> (i32, i32) {
    %c0_i32 = arith.constant 0 : i32
    %c0_i32_0 = arith.constant 0 : i32
    return %arg0, %c0_i32 : i32, i32
  }
  func.func @transform_3(%arg0: i32, %arg1: i32, %arg2: memref<1xi32, #tpu.memory_space<smem>>, %arg3: memref<1xi32, #tpu.memory_space<smem>>) -> (i32, i32) {
    %c0_i32 = arith.constant 0 : i32
    %c0_i32_0 = arith.constant 0 : i32
    %c0_i32_1 = arith.constant 0 : i32
    return %c0_i32, %c0_i32_0 : i32, i32
  }
  func.func @transform_4(%arg0: i32, %arg1: i32, %arg2: memref<1xi32, #tpu.memory_space<smem>>, %arg3: memref<1xi32, #tpu.memory_space<smem>>) -> (i32, i32) {
    %c0_i32 = arith.constant 0 : i32
    %c0_i32_0 = arith.constant 0 : i32
    %c0_i32_1 = arith.constant 0 : i32
    return %c0_i32, %c0_i32_0 : i32, i32
  }
  func.func @transform_5(%arg0: i32, %arg1: i32, %arg2: memref<1xi32, #tpu.memory_space<smem>>, %arg3: memref<1xi32, #tpu.memory_space<smem>>) -> (i32, i32) {
    %c0_i32 = arith.constant 0 : i32
    %c0_i32_0 = arith.constant 0 : i32
    %c0_i32_1 = arith.constant 0 : i32
    return %c0_i32, %c0_i32_0 : i32, i32
  }
  func.func @transform_6(%arg0: i32, %arg1: i32, %arg2: memref<1xi32, #tpu.memory_space<smem>>, %arg3: memref<1xi32, #tpu.memory_space<smem>>) -> (i32, i32) {
    %c0_i32 = arith.constant 0 : i32
    %c0_i32_0 = arith.constant 0 : i32
    %c0_i32_1 = arith.constant 0 : i32
    return %c0_i32, %c0_i32_0 : i32, i32
  }
  func.func @transform_7(%arg0: i32, %arg1: i32, %arg2: memref<1xi32, #tpu.memory_space<smem>>, %arg3: memref<1xi32, #tpu.memory_space<smem>>) -> (i32, i32) {
    %c0_i32 = arith.constant 0 : i32
    %c0_i32_0 = arith.constant 0 : i32
    %c0_i32_1 = arith.constant 0 : i32
    return %c0_i32, %c0_i32_0 : i32, i32
  }
  func.func @transform_8(%arg0: i32, %arg1: i32, %arg2: memref<1xi32, #tpu.memory_space<smem>>, %arg3: memref<1xi32, #tpu.memory_space<smem>>) -> (i32, i32) {
    %c0_i32 = arith.constant 0 : i32
    %c0_i32_0 = arith.constant 0 : i32
    return %arg0, %c0_i32 : i32, i32
  }
}

</mosaic_0001>

<bundles_post_ra>
// kernel: tpu_custom_call.1
= control target key start
LH: loop header
LB: loop body
LE: loop exit
PB: predicated region body
PF: predicated region fallthrough
CT: control target
= control target key end

     0   :  { %17 = vsyncpa [#allocation7], 0  ;;  %s1980_s0 = inlined_call_operand.<no memory space> [shape: s32[1], index: 0, kind: input, shape index: {}]   ;;  %s1981_s1 = inlined_call_operand.<no memory space> [shape: s32[1], index: 1, kind: input, shape index: {}]   ;;  %s1982_s2 = inlined_call_operand.vmem [shape: s32[1,256], index: 2, kind: input, shape index: {}]   ;;  %s1983_s3 = inlined_call_operand.hbm [shape: f32[256,128], index: 3, kind: input, shape index: {}]   ;;  %s1984_s4 = inlined_call_operand.hbm [shape: f32[128,128], index: 4, kind: input, shape index: {}]   ;;  %s1985_s5 = inlined_call_operand.hbm [shape: f32[128,128], index: 5, kind: input, shape index: {}]   ;;  %s1986_s6 = inlined_call_operand.hbm [shape: f32[128,128], index: 6, kind: input, shape index: {}]   ;;  %s1987_s7 = inlined_call_operand.vmem [shape: f32[1,128], index: 7, kind: input, shape index: {}]   ;;  %s1988_s8 = inlined_call_operand.hbm [shape: f32[128,128], index: 8, kind: input, shape index: {}]   ;;  %s1989_s9 = inlined_call_operand.vmem [shape: f32[1,128], index: 9, kind: input, shape index: {}]   ;;  %s1990_s10 = inlined_call_operand.hbm [shape: f32[128,128], index: 10, kind: output, shape index: {}]  }
   0x1   :  { %18 = vsyncpa [#allocation10], 0 }
   0x2   :  { %19 = vsyncpa [#allocation13], 0 }
   0x3   :  { %20 = vsyncpa [#allocation8], 0  ;;  %s1744_s13 = smov [#allocation9]   ;;  %s1745_s15 = smov [#allocation12]  }
   0x4   :  { %s52_s14 = sshll.u32 %s1744_s13, 4  ;;  %s76_s16 = sshll.u32 %s1745_s15, 4  ;;  %s53_s14 = int_to_ptr.vmem [resolvable:$true] %s52_s14  ;;  %s1809_s16 = int_to_ptr.vmem [resolvable:$true] %s76_s16 }
   0x5   :  { %s1602_s19 = scalar_lea.hbm %s1984_s4, 2048 }
   0x6   :  { %p1603_p0 = scmp.ne.s32.totalorder %s1984_s4, %s1602_s19  ;;  %p1606_p1 = scmp.lt.u32.totalorder %s1602_s19, %s1984_s4 }
   0x8   :  { %p1608_p2 = pnand %p1606_p1, %p1603_p0 }
   0xa   :  { %1611 = shalt.err (!%p1608_p2)
}
   0xb   :  { %s1612_s24 = scalar_lea.vmem %s53_s14, 2048  ;;  %p1617_p4 = scmp.lt.s32.totalorder %s53_s14, %s53_s14 }
   0xc   :  { %p1613_p3 = scmp.ne.s32.totalorder %s53_s14, %s1612_s24  ;;  %p1618_p5 = scmp.lt.s32.totalorder %s1612_s24, %s1612_s24 }
   0xe   :  { %p1619_p6 = por %p1618_p5, %p1617_p4 }
  0x10   :  { %p1620_p7 = pnand %p1619_p6, %p1613_p3 }
  0x12   :  { %1623 = shalt.err (!%p1620_p7)
}
  0x13   :  { %s1746_s25 = smov 128   ;;  %s1747_s26 = smov 8  }
  0x14   :  { %58 = dma.hbm_to_vmem [thread:$0]  %s1984_s4, 2048, %s53_s14, [#allocation10], %s1746_s25, %s1746_s25, %s1747_s26  }
  0x15   :  { %s1624_s11 = scalar_lea.hbm %s1986_s6, 2048 }
  0x16   :  { %p1625_p8 = scmp.ne.s32.totalorder %s1986_s6, %s1624_s11  ;;  %p1628_p9 = scmp.lt.u32.totalorder %s1624_s11, %s1986_s6 }
  0x18   :  { %p1630_p10 = pnand %p1628_p9, %p1625_p8 }
  0x1a   :  { %1633 = shalt.err (!%p1630_p10)
}
  0x1b   :  { %s1634_s18 = scalar_lea.vmem %s1809_s16, 2048  ;;  %p1639_p12 = scmp.lt.s32.totalorder %s1809_s16, %s1809_s16 }
  0x1c   :  { %p1635_p11 = scmp.ne.s32.totalorder %s1809_s16, %s1634_s18  ;;  %p1640_p13 = scmp.lt.s32.totalorder %s1634_s18, %s1634_s18 }
  0x1e   :  { %p1641_p0 = por %p1640_p13, %p1639_p12 }
  0x20   :  { %p1642_p1 = pnand %p1641_p0, %p1635_p11 }
  0x22   :  { %1645 = shalt.err (!%p1642_p1)
}
  0x23   :  { %82 = dma.hbm_to_vmem [thread:$0]  %s1986_s6, 2048, %s1809_s16, [#allocation13], %s1746_s25, %s1746_s25, %s1747_s26  }
  0x24   :  { %s1079_s21 = sshll.u32 %s1980_s0, 11  ;;  %s1748_s27 = smov [#allocation6]  }
  0x25   :  { %s39_s24 = scalar_lea.hbm %s1983_s3, %s1079_s21  ;;  %s40_s28 = sshll.u32 %s1748_s27, 4  ;;  %s41_s28 = int_to_ptr.vmem [resolvable:$true] %s40_s28 }
  0x26   :  { %s1646_s29 = scalar_lea.hbm %s39_s24, 2048  ;;  %s1648_s12 = scalar_lea.hbm %s1983_s3, 4096 }
  0x27   :  { %p1647_p2 = scmp.ne.s32.totalorder %s39_s24, %s1646_s29  ;;  %p1649_p3 = scmp.lt.u32.totalorder %s39_s24, %s1983_s3 }
  0x28   :  { %p1650_p4 = scmp.lt.u32.totalorder %s1648_s12, %s1646_s29  ;;  %p1652_p6 = scmp.lt.u32.totalorder %s1646_s29, %s39_s24 }
  0x2a   :  { %p1651_p5 = por %p1650_p4, %p1649_p3 }
  0x2c   :  { %p1653_p7 = por %p1652_p6, %p1651_p5 }
  0x2e   :  { %p1654_p8 = pnand %p1653_p7, %p1647_p2 }
  0x30   :  { %1657 = shalt.err (!%p1654_p8)
}
  0x31   :  { %s1658_s6 = scalar_lea.vmem %s41_s28, 2048  ;;  %p1663_p10 = scmp.lt.s32.totalorder %s41_s28, %s41_s28 }
  0x32   :  { %p1659_p9 = scmp.ne.s32.totalorder %s41_s28, %s1658_s6  ;;  %p1664_p11 = scmp.lt.s32.totalorder %s1658_s6, %s1658_s6 }
  0x34   :  { %p1665_p12 = por %p1664_p11, %p1663_p10 }
  0x36   :  { %p1666_p13 = pnand %p1665_p12, %p1659_p9 }
  0x38   :  { %1669 = shalt.err (!%p1666_p13)
}
  0x39   :  { %46 = dma.hbm_to_vmem [thread:$0]  %s39_s24, 2048, %s41_s28, [#allocation7], %s1746_s25, %s1746_s25, %s1747_s26  }
  0x3a   :  { %s1749_s16 = smov [#allocation11]   ;;  %s1750_s3 = smov [#allocation14]  }
  0x3b   :  { %s64_s17 = sshll.u32 %s1749_s16, 4  ;;  %s90_s18 = sshll.u32 %s1750_s3, 4  ;;  %s65_s17 = int_to_ptr.vmem [resolvable:$true] %s64_s17  ;;  %s91_s18 = int_to_ptr.vmem [resolvable:$true] %s90_s18 }
  0x3c   :  { %s1670_s19 = scalar_lea.hbm %s1985_s5, 2048 }
  0x3d   :  { %p1671_p0 = scmp.ne.s32.totalorder %s1985_s5, %s1670_s19  ;;  %p1674_p1 = scmp.lt.u32.totalorder %s1670_s19, %s1985_s5 }
  0x3f   :  { %p1676_p2 = pnand %p1674_p1, %p1671_p0 }
  0x41   :  { %1679 = shalt.err (!%p1676_p2)
}
  0x42   :  { %s1680_s24 = scalar_lea.vmem %s65_s17, 2048  ;;  %p1685_p4 = scmp.lt.s32.totalorder %s65_s17, %s65_s17 }
  0x43   :  { %p1681_p3 = scmp.ne.s32.totalorder %s65_s17, %s1680_s24  ;;  %p1686_p5 = scmp.lt.s32.totalorder %s1680_s24, %s1680_s24 }
  0x45   :  { %p1687_p6 = por %p1686_p5, %p1685_p4 }
  0x47   :  { %p1688_p7 = pnand %p1687_p6, %p1681_p3 }
  0x49   :  { %1691 = shalt.err (!%p1688_p7)
}
  0x4a   :  { %70 = dma.hbm_to_vmem [thread:$0]  %s1985_s5, 2048, %s65_s17, [#allocation10], %s1746_s25, %s1746_s25, %s1747_s26  }
  0x4b   :  { %s1692_s11 = scalar_lea.hbm %s1988_s8, 2048 }
  0x4c   :  { %p1693_p8 = scmp.ne.s32.totalorder %s1988_s8, %s1692_s11  ;;  %p1696_p9 = scmp.lt.u32.totalorder %s1692_s11, %s1988_s8 }
  0x4e   :  { %p1698_p10 = pnand %p1696_p9, %p1693_p8 }
  0x50   :  { %1701 = shalt.err (!%p1698_p10)
}
  0x51   :  { %s1702_s16 = scalar_lea.vmem %s91_s18, 2048  ;;  %p1707_p12 = scmp.lt.s32.totalorder %s91_s18, %s91_s18 }
  0x52   :  { %p1703_p11 = scmp.ne.s32.totalorder %s91_s18, %s1702_s16  ;;  %p1708_p13 = scmp.lt.s32.totalorder %s1702_s16, %s1702_s16 }
  0x54   :  { %p1709_p0 = por %p1708_p13, %p1707_p12 }
  0x56   :  { %p1710_p1 = pnand %p1709_p0, %p1703_p11 }
  0x58   :  { %1713 = shalt.err (!%p1710_p1)
}
  0x59   :  { %96 = dma.hbm_to_vmem [thread:$0]  %s1988_s8, 2048, %s91_s18, [#allocation13], %s1746_s25, %s1746_s25, %s1747_s26  }
  0x5a   :  { %1736 = dma.done.wait [#allocation7], 2048  }
  0x5b   :  { %1737 = vsyncadd [#allocation7], 4294965248 }
  0x5c   :  { %1738 = dma.done.wait [#allocation10], 4096  }
  0x5d   :  { %1739 = vsyncadd [#allocation10], 4294963200 }
  0x5e   :  { %1740 = dma.done.wait [#allocation13], 4096  }
  0x5f   :  { %1741 = vsyncadd [#allocation13], 4294963200  ;;  %p121_p2 = scmp.lt.s32.totalorder %s1980_s0, 1  ;;  %v1751_v0 = vmov 0.0   ;;  %p1043_p3 = scmp.le.s32.totalorder %s1981_s1, 0 }
  0x60   :  { %133 = vst [vmem:[#allocation2] sm:$0xff] %v1751_v0  ;;  %134 = vst [vmem:[#allocation2 + $0x8] sm:$0xff] %v1751_v0  ;;  %v243_v1 = vld [vmem:[#allocation6] sm:$0xff] (!%p1043_p3)  ;;  %v244_v2 = vld [vmem:[#allocation6 + $0x8] sm:$0xff] (!%p1043_p3)  ;;  %v158_v4 = vlaneseq (!%p1043_p3)  ;;  %v1752_v16 = vmov (!%p1043_p3), 1.0  }
  0x61   :  { %135 = vst [vmem:[#allocation2 + $0x10] sm:$0xff] %v1751_v0  ;;  %136 = vst [vmem:[#allocation2 + $0x18] sm:$0xff] %v1751_v0  ;;  %s1992_s0 = smov (!%p121_p2, %s1980_s0), 1  ;;  %153 = sbr.rel (%p1043_p3) target bundleno = 360 (0x168), region = 61 }
  0x62   :  { %137 = vst [vmem:[#allocation2 + $0x20] sm:$0xff] %v1751_v0  ;;  %138 = vst [vmem:[#allocation2 + $0x28] sm:$0xff] %v1751_v0  ;;  %s123_s22 = scalar_lea.vmem %s1982_s2, %s1992_s0  ;;  %v245_v3 = vld [vmem:[#allocation6 + $0x10] sm:$0xff] (!%p1043_p3)  ;;  %v1432_v5 = vpack.c.bf16 (!%p1043_p3), %v244_v2, %v243_v1  ;;  %v246_v6 = vld [vmem:[#allocation6 + $0x18] sm:$0xff] (!%p1043_p3)  ;;  %v1907_v10 = vshrl.u32 (!%p1043_p3), %v158_v4, 7 }
  0x63   :  { %139 = vst [vmem:[#allocation2 + $0x30] sm:$0xff] %v1751_v0  ;;  %140 = vst [vmem:[#allocation2 + $0x38] sm:$0xff] %v1751_v0  ;;  %v1436_v7 = vpack.c.bf16 (!%p1043_p3), %v246_v6, %v245_v3  ;;  %v247_v8 = vld [vmem:[#allocation6 + $0x20] sm:$0xff] (!%p1043_p3)  ;;  %v248_v9 = vld [vmem:[#allocation6 + $0x28] sm:$0xff] (!%p1043_p3) }
  0x64   :  { %141 = vst [vmem:[#allocation2 + $0x40] sm:$0xff] %v1751_v0  ;;  %142 = vst [vmem:[#allocation2 + $0x48] sm:$0xff] %v1751_v0  ;;  %1433 = vmatprep.subr.bf16.mxu0 (!%p1043_p3), %v1432_v5  ;;  %1560 = vmatprep.subr.bf16.mxu1 (!%p1043_p3), %v1432_v5  ;;  %v167_v11 = vadd.s32 (!%p1043_p3), 64, %v1907_v10  ;;  %v1440_v12 = vpack.c.bf16 (!%p1043_p3), %v248_v9, %v247_v8  ;;  %v1910_v13 = vld [vmem:[%s123_s22] ss:$0 sm:$0xff] (!%p1043_p3)  ;;  %v249_v14 = vld [vmem:[#allocation6 + $0x30] sm:$0xff] (!%p1043_p3) }
  0x65   :  { %143 = vst [vmem:[#allocation2 + $0x50] sm:$0xff] %v1751_v0  ;;  %144 = vst [vmem:[#allocation2 + $0x58] sm:$0xff] %v1751_v0  ;;  %1435 = vmatpush3.bf16.msra.mxu0 (!%p1043_p3), %v1432_v5  ;;  %1568 = vmatpush3.bf16.msra.mxu1 (!%p1043_p3), %v1432_v5  ;;  %v250_v15 = vld [vmem:[#allocation6 + $0x38] sm:$0xff] (!%p1043_p3)  ;;  %vm179_vm0 = vcmp.eq.s32.totalorder (!%p1043_p3), %v1907_v10, %v1910_v13  ;;  %v251_v18 = vld [vmem:[#allocation6 + $0x40] sm:$0xff] (!%p1043_p3)  ;;  %v160_v30 = vadd.s32 (!%p1043_p3), 8, %v1907_v10  ;;  %v168_v31 = vadd.s32 (!%p1043_p3), 72, %v1907_v10 }
  0x66   :  { %145 = vst [vmem:[#allocation2 + $0x60] sm:$0xff] %v1751_v0  ;;  %146 = vst [vmem:[#allocation2 + $0x68] sm:$0xff] %v1751_v0  ;;  %1437 = vmatprep.subr.bf16.mxu0 (!%p1043_p3), %v1436_v7  ;;  %1561 = vmatprep.subr.bf16.mxu1 (!%p1043_p3), %v1436_v7  ;;  %vm187_vm1 = vcmp.eq.s32.totalorder (!%p1043_p3), %v167_v11, %v1910_v13  ;;  %v1444_v17 = vpack.c.bf16 (!%p1043_p3), %v250_v15, %v249_v14  ;;  %v252_v19 = vld [vmem:[#allocation6 + $0x48] sm:$0xff] (!%p1043_p3)  ;;  %v253_v21 = vld [vmem:[#allocation6 + $0x50] sm:$0xff] (!%p1043_p3)  ;;  %v161_v32 = vadd.s32 (!%p1043_p3), 16, %v1907_v10 }
  0x67   :  { %147 = vst [vmem:[#allocation2 + $0x70] sm:$0xff] %v1751_v0  ;;  %148 = vst [vmem:[#allocation2 + $0x78] sm:$0xff] %v1751_v0  ;;  %1240 = vmatprep.mubr.msk.f32.mxu0 (!%p1043_p3), %vm179_vm0, %v1752_v16  ;;  %1252 = vmatprep.mubr.msk.f32.mxu1 (!%p1043_p3), %vm187_vm1, %v1752_v16  ;;  %v1448_v20 = vpack.c.bf16 (!%p1043_p3), %v252_v19, %v251_v18  ;;  %v254_v22 = vld [vmem:[#allocation6 + $0x58] sm:$0xff] (!%p1043_p3)  ;;  %v255_v24 = vld [vmem:[#allocation6 + $0x60] sm:$0xff] (!%p1043_p3)  ;;  %v169_v33 = vadd.s32 (!%p1043_p3), 80, %v1907_v10  ;;  %vm180_vm2 = vcmp.eq.s32.totalorder (!%p1043_p3), %v160_v30, %v1910_v13 }
  0x68   :  { %v1452_v23 = vpack.c.bf16 %v254_v22, %v253_v21  ;;  %v256_v25 = vld [vmem:[#allocation6 + $0x68] sm:$0xff]  ;;  %v257_v27 = vld [vmem:[#allocation6 + $0x70] sm:$0xff]  ;;  %v258_v28 = vld [vmem:[#allocation6 + $0x78] sm:$0xff]  ;;  %vm188_vm3 = vcmp.eq.s32.totalorder %v168_v31, %v1910_v13  ;;  %v162_v34 = vadd.s32 24, %v1907_v10  ;;  %v170_v35 = vadd.s32 88, %v1907_v10 }
  0x69   :  { %1439 = vmatpush3.bf16.msra.mxu0 %v1436_v7  ;;  %1569 = vmatpush3.bf16.msra.mxu1 %v1436_v7  ;;  %v1456_v26 = vpack.c.bf16 %v256_v25, %v255_v24  ;;  %v1460_v29 = vpack.c.bf16 %v258_v28, %v257_v27  ;;  %vm181_vm4 = vcmp.eq.s32.totalorder %v161_v32, %v1910_v13  ;;  %v163_v36 = vadd.s32 32, %v1907_v10  ;;  %v228_v44 = vld [vmem:[#allocation2 + $0x8] sm:$0xff]  ;;  %v227_v46 = vld [vmem:[#allocation2] sm:$0xff]  ;;  %v230_v56 = vld [vmem:[#allocation2 + $0x18] sm:$0xff] }
  0x6a   :  { %1441 = vmatprep.subr.bf16.mxu0 %v1440_v12  ;;  %1562 = vmatprep.subr.bf16.mxu1 %v1440_v12  ;;  %vm189_vm5 = vcmp.eq.s32.totalorder %v169_v33, %v1910_v13  ;;  %v171_v37 = vadd.s32 96, %v1907_v10  ;;  %vm182_vm6 = vcmp.eq.s32.totalorder %v162_v34, %v1910_v13  ;;  %vm190_vm7 = vcmp.eq.s32.totalorder %v170_v35, %v1910_v13  ;;  %v229_v58 = vld [vmem:[#allocation2 + $0x10] sm:$0xff]  ;;  %v232_v4 = vld [vmem:[#allocation2 + $0x28] sm:$0xff]  ;;  %v231_v6 = vld [vmem:[#allocation2 + $0x20] sm:$0xff] }
  0x6b   :  { %v164_v38 = vadd.s32 40, %v1907_v10  ;;  %v172_v39 = vadd.s32 104, %v1907_v10  ;;  %vm183_vm8 = vcmp.eq.s32.totalorder %v163_v36, %v1910_v13  ;;  %v165_v40 = vadd.s32 48, %v1907_v10  ;;  %v236_v45 = vld [vmem:[#allocation2 + $0x48] sm:$0xff]  ;;  %v235_v47 = vld [vmem:[#allocation2 + $0x40] sm:$0xff]  ;;  %v233_v18 = vld [vmem:[#allocation2 + $0x30] sm:$0xff] }
  0x6c   :  { %vm191_vm9 = vcmp.eq.s32.totalorder %v171_v37, %v1910_v13  ;;  %v173_v41 = vadd.s32 112, %v1907_v10  ;;  %v166_v42 = vadd.s32 56, %v1907_v10  ;;  %v174_v43 = vadd.s32 120, %v1907_v10  ;;  %v238_v57 = vld [vmem:[#allocation2 + $0x58] sm:$0xff]  ;;  %v237_v59 = vld [vmem:[#allocation2 + $0x50] sm:$0xff] }
  0x6d   :  { %1443 = vmatpush3.bf16.msra.mxu0 %v1440_v12  ;;  %1570 = vmatpush3.bf16.msra.mxu1 %v1440_v12  ;;  %vm184_vm10 = vcmp.eq.s32.totalorder %v164_v38, %v1910_v13  ;;  %vm192_vm11 = vcmp.eq.s32.totalorder %v172_v39, %v1910_v13  ;;  %vm185_vm12 = vcmp.eq.s32.totalorder %v165_v40, %v1910_v13  ;;  %v240_v5 = vld [vmem:[#allocation2 + $0x68] sm:$0xff]  ;;  %v239_v7 = vld [vmem:[#allocation2 + $0x60] sm:$0xff] }
  0x6e   :  { %1445 = vmatprep.subr.bf16.mxu0 %v1444_v17  ;;  %1563 = vmatprep.subr.bf16.mxu1 %v1444_v17  ;;  %vm193_vm13 = vcmp.eq.s32.totalorder %v173_v41, %v1910_v13  ;;  %vm186_vm14 = vcmp.eq.s32.totalorder %v166_v42, %v1910_v13  ;;  %vm194_vm15 = vcmp.eq.s32.totalorder %v174_v43, %v1910_v13  ;;  %v241_v19 = vld [vmem:[#allocation2 + $0x70] sm:$0xff] }
  0x71   :  { %1447 = vmatpush3.bf16.msra.mxu0 %v1444_v17  ;;  %1571 = vmatpush3.bf16.msra.mxu1 %v1444_v17  ;;  %v242_v17 = vld [vmem:[#allocation2 + $0x78] sm:$0xff] }
  0x72   :  { %1449 = vmatprep.subr.bf16.mxu0 %v1448_v20  ;;  %1564 = vmatprep.subr.bf16.mxu1 %v1448_v20 }
  0x75   :  { %1451 = vmatpush3.bf16.msra.mxu0 %v1448_v20  ;;  %1572 = vmatpush3.bf16.msra.mxu1 %v1448_v20 }
  0x76   :  { %1453 = vmatprep.subr.bf16.mxu0 %v1452_v23  ;;  %1565 = vmatprep.subr.bf16.mxu1 %v1452_v23 }
  0x79   :  { %1455 = vmatpush3.bf16.msra.mxu0 %v1452_v23  ;;  %1573 = vmatpush3.bf16.msra.mxu1 %v1452_v23 }
  0x7a   :  { %1457 = vmatprep.subr.bf16.mxu0 %v1456_v26  ;;  %1566 = vmatprep.subr.bf16.mxu1 %v1456_v26 }
  0x7d   :  { %1459 = vmatpush3.bf16.msra.mxu0 %v1456_v26  ;;  %1574 = vmatpush3.bf16.msra.mxu1 %v1456_v26 }
  0x7e   :  { %1461 = vmatprep.subr.bf16.mxu0 %v1460_v29  ;;  %1567 = vmatprep.subr.bf16.mxu1 %v1460_v29 }
  0x81   :  { %1463 = vmatpush3.bf16.msra.mxu0 %v1460_v29  ;;  %1575 = vmatpush3.bf16.msra.mxu1 %v1460_v29 }
  0x84   :  { %1241 = vmatmul.mubr.msk.f32.vlgmr.msra.gmra.mrb[0].mxu0 %vm180_vm2, %v1752_v16  ;;  %1253 = vmatmul.mubr.msk.f32.vlgmr.msra.gmra.mrb[0].mxu1 %vm188_vm3, %v1752_v16 }
  0x85   :  { %1243 = vmatprep.mubr.msk.f32.mxu0 %vm181_vm4, %v1752_v16  ;;  %1255 = vmatprep.mubr.msk.f32.mxu1 %vm189_vm5, %v1752_v16 }
  0x88   :  { %1244 = vmatmul.mubr.msk.f32.gmra.mrb[2].mxu0 %vm182_vm6, %v1752_v16  ;;  %1256 = vmatmul.mubr.msk.f32.gmra.mrb[2].mxu1 %vm190_vm7, %v1752_v16 }
  0x89   :  { %1246 = vmatprep.mubr.msk.f32.mxu0 %vm183_vm8, %v1752_v16  ;;  %1258 = vmatprep.mubr.msk.f32.mxu1 %vm191_vm9, %v1752_v16 }
  0x8c   :  { %1247 = vmatmul.mubr.msk.f32.gmra.mrb[4].mxu0 %vm184_vm10, %v1752_v16  ;;  %1259 = vmatmul.mubr.msk.f32.gmra.mrb[4].mxu1 %vm192_vm11, %v1752_v16 }
  0x8d   :  { %1249 = vmatprep.mubr.msk.f32.mxu0 %vm185_vm12, %v1752_v16  ;;  %1261 = vmatprep.mubr.msk.f32.mxu1 %vm193_vm13, %v1752_v16 }
  0x90   :  { %1250 = vmatmul.mubr.msk.f32.gmra.mrb[6].mxu0 %vm186_vm14, %v1752_v16  ;;  %1262 = vmatmul.mubr.msk.f32.gmra.mrb[6].mxu1 %vm194_vm15, %v1752_v16  ;;  %v234_v16 = vld [vmem:[#allocation2 + $0x38] sm:$0xff] }
 0x157   :  { %v1242_v48 = vpop.f32.mrb[0].mxu0  ;;  %v1254_v49 = vpop.f32.mrb[0].mxu1 }
 0x158   :  { %v405_v50 = vadd.f32 %v1242_v48, %v228_v44  ;;  %v413_v51 = vadd.f32 %v1254_v49, %v236_v45  ;;  %v325_v52 = vpop.f32.mrb[1].mxu0  ;;  %v365_v53 = vpop.f32.mrb[1].mxu1 }
 0x159   :  { %v404_v54 = vadd.f32 %v325_v52, %v227_v46  ;;  %v412_v55 = vadd.f32 %v365_v53, %v235_v47 }
 0x15a   :  { %421 = vst [vmem:[#allocation2 + $0x8] sm:$0xff] %v405_v50  ;;  %429 = vst [vmem:[#allocation2 + $0x48] sm:$0xff] %v413_v51 }
 0x15b   :  { %420 = vst [vmem:[#allocation2] sm:$0xff] %v404_v54  ;;  %428 = vst [vmem:[#allocation2 + $0x40] sm:$0xff] %v412_v55  ;;  %v1245_v60 = vpop.f32.mrb[2].mxu0  ;;  %v1257_v61 = vpop.f32.mrb[2].mxu1 }
 0x15c   :  { %v407_v62 = vadd.f32 %v1245_v60, %v230_v56  ;;  %v415_v63 = vadd.f32 %v1257_v61, %v238_v57  ;;  %v335_v0 = vpop.f32.mrb[3].mxu0  ;;  %v375_v1 = vpop.f32.mrb[3].mxu1 }
 0x15d   :  { %v406_v2 = vadd.f32 %v335_v0, %v229_v58  ;;  %v414_v3 = vadd.f32 %v375_v1, %v237_v59 }
 0x15e   :  { %423 = vst [vmem:[#allocation2 + $0x18] sm:$0xff] %v407_v62  ;;  %431 = vst [vmem:[#allocation2 + $0x58] sm:$0xff] %v415_v63 }
 0x15f   :  { %422 = vst [vmem:[#allocation2 + $0x10] sm:$0xff] %v406_v2  ;;  %430 = vst [vmem:[#allocation2 + $0x50] sm:$0xff] %v414_v3  ;;  %v1248_v8 = vpop.f32.mrb[4].mxu0  ;;  %v1260_v9 = vpop.f32.mrb[4].mxu1 }
 0x160   :  { %v409_v10 = vadd.f32 %v1248_v8, %v232_v4  ;;  %v417_v11 = vadd.f32 %v1260_v9, %v240_v5  ;;  %v345_v12 = vpop.f32.mrb[5].mxu0  ;;  %v385_v13 = vpop.f32.mrb[5].mxu1 }
 0x161   :  { %v408_v14 = vadd.f32 %v345_v12, %v231_v6  ;;  %v416_v15 = vadd.f32 %v385_v13, %v239_v7 }
 0x162   :  { %425 = vst [vmem:[#allocation2 + $0x28] sm:$0xff] %v409_v10  ;;  %433 = vst [vmem:[#allocation2 + $0x68] sm:$0xff] %v417_v11 }
 0x163   :  { %424 = vst [vmem:[#allocation2 + $0x20] sm:$0xff] %v408_v14  ;;  %432 = vst [vmem:[#allocation2 + $0x60] sm:$0xff] %v416_v15  ;;  %v1251_v20 = vpop.f32.mrb[6].mxu0  ;;  %v1263_v21 = vpop.f32.mrb[6].mxu1 }
 0x164   :  { %v411_v22 = vadd.f32 %v1251_v20, %v234_v16  ;;  %v419_v23 = vadd.f32 %v1263_v21, %v242_v17  ;;  %v355_v24 = vpop.f32.mrb[7].mxu0  ;;  %v395_v25 = vpop.f32.mrb[7].mxu1 }
 0x165   :  { %v410_v26 = vadd.f32 %v355_v24, %v233_v18  ;;  %v418_v27 = vadd.f32 %v395_v25, %v241_v19 }
 0x166   :  { %427 = vst [vmem:[#allocation2 + $0x38] sm:$0xff] %v411_v22  ;;  %435 = vst [vmem:[#allocation2 + $0x78] sm:$0xff] %v419_v23 }
 0x167   :  { %426 = vst [vmem:[#allocation2 + $0x30] sm:$0xff] %v410_v26  ;;  %434 = vst [vmem:[#allocation2 + $0x70] sm:$0xff] %v418_v27 }
 0x168 PF:  { %v487_v28 = vld [vmem:[#allocation12] sm:$0xff]  ;;  %v488_v29 = vld [vmem:[#allocation12 + $0x8] sm:$0xff]  ;;  %v489_v30 = vld [vmem:[#allocation12 + $0x10] sm:$0xff] }
 0x169   :  { %v1464_v31 = vpack.c.bf16 %v488_v29, %v487_v28  ;;  %v490_v32 = vld [vmem:[#allocation12 + $0x18] sm:$0xff]  ;;  %v491_v34 = vld [vmem:[#allocation12 + $0x20] sm:$0xff]  ;;  %v492_v35 = vld [vmem:[#allocation12 + $0x28] sm:$0xff] }
 0x16a   :  { %v1468_v33 = vpack.c.bf16 %v490_v32, %v489_v30  ;;  %v1472_v36 = vpack.c.bf16 %v492_v35, %v491_v34  ;;  %v471_v37 = vld [vmem:[#allocation2] sm:$0xff]  ;;  %v493_v38 = vld [vmem:[#allocation12 + $0x30] sm:$0xff]  ;;  %v494_v39 = vld [vmem:[#allocation12 + $0x38] sm:$0xff] }
 0x16b   :  { %1465 = vmatprep.subr.bf16.mxu0 %v1464_v31  ;;  %1296 = vmatprep.mubr.f32.mxu0 %v471_v37  ;;  %v1476_v40 = vpack.c.bf16 %v494_v39, %v493_v38  ;;  %v495_v41 = vld [vmem:[#allocation12 + $0x40] sm:$0xff]  ;;  %v496_v42 = vld [vmem:[#allocation12 + $0x48] sm:$0xff]  ;;  %v497_v44 = vld [vmem:[#allocation12 + $0x50] sm:$0xff] }
 0x16c   :  { %1467 = vmatpush3.bf16.msra.mxu0 %v1464_v31  ;;  %v1480_v43 = vpack.c.bf16 %v496_v42, %v495_v41  ;;  %v498_v45 = vld [vmem:[#allocation12 + $0x58] sm:$0xff]  ;;  %v499_v47 = vld [vmem:[#allocation12 + $0x60] sm:$0xff]  ;;  %v500_v48 = vld [vmem:[#allocation12 + $0x68] sm:$0xff] }
 0x16d   :  { %1469 = vmatprep.subr.bf16.mxu0 %v1468_v33  ;;  %v1484_v46 = vpack.c.bf16 %v498_v45, %v497_v44  ;;  %v1488_v49 = vpack.c.bf16 %v500_v48, %v499_v47  ;;  %v501_v50 = vld [vmem:[#allocation12 + $0x70] sm:$0xff]  ;;  %v832_v51 = vld [vmem:[#allocation14] sm:$0xff]  ;;  %v833_v52 = vld [vmem:[#allocation14 + $0x8] sm:$0xff] }
 0x16e   :  { %v502_v53 = vld [vmem:[#allocation12 + $0x78] sm:$0xff]  ;;  %v1528_v54 = vpack.c.bf16 %v833_v52, %v832_v51  ;;  %v834_v55 = vld [vmem:[#allocation14 + $0x10] sm:$0xff]  ;;  %v836_v58 = vld [vmem:[#allocation14 + $0x20] sm:$0xff] }
 0x16f   :  { %v835_v56 = vld [vmem:[#allocation14 + $0x18] sm:$0xff]  ;;  %v837_v59 = vld [vmem:[#allocation14 + $0x28] sm:$0xff]  ;;  %v1492_v60 = vpack.c.bf16 %v502_v53, %v501_v50  ;;  %v455_v61 = vld [vmem:[#allocation11] sm:$0xff] }
 0x170   :  { %1471 = vmatpush3.bf16.msra.mxu0 %v1468_v33  ;;  %v1532_v57 = vpack.c.bf16 %v835_v56, %v834_v55  ;;  %1529 = vmatprep.subr.bf16.mxu1 %v1528_v54  ;;  %v456_v62 = vld [vmem:[#allocation11 + $0x8] sm:$0xff]  ;;  %v1536_v63 = vpack.c.bf16 %v837_v59, %v836_v58  ;;  %v838_v0 = vld [vmem:[#allocation14 + $0x30] sm:$0xff]  ;;  %v839_v1 = vld [vmem:[#allocation14 + $0x38] sm:$0xff] }
 0x171   :  { %1473 = vmatprep.subr.bf16.mxu0 %v1472_v36  ;;  %1531 = vmatpush3.bf16.msra.mxu1 %v1528_v54  ;;  %v1496_v2 = vpack.c.bf16 %v456_v62, %v455_v61  ;;  %v457_v3 = vld [vmem:[#allocation11 + $0x10] sm:$0xff]  ;;  %v458_v4 = vld [vmem:[#allocation11 + $0x18] sm:$0xff]  ;;  %v1540_v5 = vpack.c.bf16 %v839_v1, %v838_v0  ;;  %v840_v6 = vld [vmem:[#allocation14 + $0x40] sm:$0xff] }
 0x172   :  { %1533 = vmatprep.subr.bf16.mxu1 %v1532_v57  ;;  %v841_v7 = vld [vmem:[#allocation14 + $0x48] sm:$0xff]  ;;  %v473_v9 = vld [vmem:[#allocation2 + $0x10] sm:$0xff]  ;;  %v1500_v10 = vpack.c.bf16 %v458_v4, %v457_v3  ;;  %v459_v11 = vld [vmem:[#allocation11 + $0x20] sm:$0xff] }
 0x173   :  { %v472_v8 = vld [vmem:[#allocation2 + $0x8] sm:$0xff]  ;;  %v1544_v13 = vpack.c.bf16 %v841_v7, %v840_v6  ;;  %v842_v14 = vld [vmem:[#allocation14 + $0x50] sm:$0xff]  ;;  %v843_v15 = vld [vmem:[#allocation14 + $0x58] sm:$0xff] }
 0x174   :  { %1475 = vmatpush3.bf16.msra.mxu0 %v1472_v36  ;;  %v460_v12 = vld [vmem:[#allocation11 + $0x28] sm:$0xff]  ;;  %v474_v16 = vld [vmem:[#allocation2 + $0x18] sm:$0xff]  ;;  %v475_v17 = vld [vmem:[#allocation2 + $0x20] sm:$0xff]  ;;  %v1548_v21 = vpack.c.bf16 %v843_v15, %v842_v14 }
 0x175   :  { %1477 = vmatprep.subr.bf16.mxu0 %v1476_v40  ;;  %1535 = vmatpush3.bf16.msra.mxu1 %v1532_v57  ;;  %v1504_v18 = vpack.c.bf16 %v460_v12, %v459_v11  ;;  %v461_v19 = vld [vmem:[#allocation11 + $0x30] sm:$0xff]  ;;  %v462_v20 = vld [vmem:[#allocation11 + $0x38] sm:$0xff]  ;;  %v844_v22 = vld [vmem:[#allocation14 + $0x60] sm:$0xff] }
 0x176   :  { %1537 = vmatprep.subr.bf16.mxu1 %v1536_v63  ;;  %v845_v23 = vld [vmem:[#allocation14 + $0x68] sm:$0xff]  ;;  %v477_v25 = vld [vmem:[#allocation2 + $0x30] sm:$0xff]  ;;  %v1508_v26 = vpack.c.bf16 %v462_v20, %v461_v19  ;;  %v463_v27 = vld [vmem:[#allocation11 + $0x40] sm:$0xff] }
 0x177   :  { %v476_v24 = vld [vmem:[#allocation2 + $0x28] sm:$0xff]  ;;  %v1552_v29 = vpack.c.bf16 %v845_v23, %v844_v22  ;;  %v478_v30 = vld [vmem:[#allocation2 + $0x38] sm:$0xff]  ;;  %v479_v31 = vld [vmem:[#allocation2 + $0x40] sm:$0xff] }
 0x178   :  { %1479 = vmatpush3.bf16.msra.mxu0 %v1476_v40  ;;  %v464_v28 = vld [vmem:[#allocation11 + $0x48] sm:$0xff]  ;;  %v465_v33 = vld [vmem:[#allocation11 + $0x50] sm:$0xff]  ;;  %v466_v34 = vld [vmem:[#allocation11 + $0x58] sm:$0xff] }
 0x179   :  { %1481 = vmatprep.subr.bf16.mxu0 %v1480_v43  ;;  %1539 = vmatpush3.bf16.msra.mxu1 %v1536_v63  ;;  %v1512_v32 = vpack.c.bf16 %v464_v28, %v463_v27  ;;  %v480_v35 = vld [vmem:[#allocation2 + $0x48] sm:$0xff]  ;;  %v481_v36 = vld [vmem:[#allocation2 + $0x50] sm:$0xff]  ;;  %v1516_v37 = vpack.c.bf16 %v466_v34, %v465_v33  ;;  %v467_v38 = vld [vmem:[#allocation11 + $0x60] sm:$0xff] }
 0x17a   :  { %1541 = vmatprep.subr.bf16.mxu1 %v1540_v5  ;;  %v468_v39 = vld [vmem:[#allocation11 + $0x68] sm:$0xff]  ;;  %v482_v40 = vld [vmem:[#allocation2 + $0x58] sm:$0xff]  ;;  %v483_v41 = vld [vmem:[#allocation2 + $0x60] sm:$0xff] }
 0x17b   :  { %v1520_v42 = vpack.c.bf16 %v468_v39, %v467_v38  ;;  %v470_v44 = vld [vmem:[#allocation11 + $0x78] sm:$0xff]  ;;  %v484_v45 = vld [vmem:[#allocation2 + $0x68] sm:$0xff]  ;;  %v441_v51 = vld [vmem:[#allocation9 + $0x10] sm:$0xff] }
 0x17c   :  { %1483 = vmatpush3.bf16.msra.mxu0 %v1480_v43  ;;  %v469_v43 = vld [vmem:[#allocation11 + $0x70] sm:$0xff]  ;;  %v486_v48 = vld [vmem:[#allocation2 + $0x78] sm:$0xff]  ;;  %v440_v50 = vld [vmem:[#allocation9 + $0x8] sm:$0xff] }
 0x17d   :  { %1485 = vmatprep.subr.bf16.mxu0 %v1484_v46  ;;  %1543 = vmatpush3.bf16.msra.mxu1 %v1540_v5  ;;  %v1524_v47 = vpack.c.bf16 %v470_v44, %v469_v43  ;;  %v442_v52 = vld [vmem:[#allocation9 + $0x18] sm:$0xff]  ;;  %v443_v53 = vld [vmem:[#allocation9 + $0x20] sm:$0xff]  ;;  %v444_v54 = vld [vmem:[#allocation9 + $0x28] sm:$0xff] }
 0x17e   :  { %1545 = vmatprep.subr.bf16.mxu1 %v1544_v13  ;;  %v445_v55 = vld [vmem:[#allocation9 + $0x30] sm:$0xff]  ;;  %v446_v56 = vld [vmem:[#allocation9 + $0x38] sm:$0xff]  ;;  %v447_v57 = vld [vmem:[#allocation9 + $0x40] sm:$0xff] }
 0x17f   :  { %v448_v58 = vld [vmem:[#allocation9 + $0x48] sm:$0xff]  ;;  %v449_v59 = vld [vmem:[#allocation9 + $0x50] sm:$0xff]  ;;  %v451_v61 = vld [vmem:[#allocation9 + $0x60] sm:$0xff] }
 0x180   :  { %1487 = vmatpush3.bf16.msra.mxu0 %v1484_v46  ;;  %v485_v46 = vld [vmem:[#allocation2 + $0x70] sm:$0xff]  ;;  %v452_v62 = vld [vmem:[#allocation9 + $0x68] sm:$0xff]  ;;  %v454_v0 = vld [vmem:[#allocation9 + $0x78] sm:$0xff] }
 0x181   :  { %1489 = vmatprep.subr.bf16.mxu0 %v1488_v49  ;;  %1547 = vmatpush3.bf16.msra.mxu1 %v1544_v13  ;;  %v453_v63 = vld [vmem:[#allocation9 + $0x70] sm:$0xff]  ;;  %v1077_v4 = vld [vmem:[%s1987_s7] ss:$0 sm:$0xff] }
 0x182   :  { %1549 = vmatprep.subr.bf16.mxu1 %v1548_v21  ;;  %v846_v1 = vld [vmem:[#allocation14 + $0x70] sm:$0xff] }
 0x184   :  { %1491 = vmatpush3.bf16.msra.mxu0 %v1488_v49  ;;  %v439_v49 = vld [vmem:[#allocation9] sm:$0xff] }
 0x185   :  { %1493 = vmatprep.subr.bf16.mxu0 %v1492_v60  ;;  %1551 = vmatpush3.bf16.msra.mxu1 %v1548_v21 }
 0x186   :  { %1553 = vmatprep.subr.bf16.mxu1 %v1552_v29 }
 0x188   :  { %1495 = vmatpush3.bf16.msra.mxu0 %v1492_v60  ;;  %v450_v60 = vld [vmem:[#allocation9 + $0x58] sm:$0xff] }
 0x189   :  { %1497 = vmatprep.subr.bf16.mxu0 %v1496_v2  ;;  %1555 = vmatpush3.bf16.msra.mxu1 %v1552_v29 }
 0x18b   :  { %1297 = vmatmul.mubr.f32.vlgmr.msra.gmra.mrb[0].mxu0 %v472_v8 }
 0x18c   :  { %1499 = vmatpush3.bf16.msra.mxu0 %v1496_v2  ;;  %1299 = vmatprep.mubr.f32.mxu0 %v473_v9  ;;  %v847_v2 = vld [vmem:[#allocation14 + $0x78] sm:$0xff] }
 0x18d   :  { %1501 = vmatprep.subr.bf16.mxu0 %v1500_v10  ;;  %v1556_v3 = vpack.c.bf16 %v847_v2, %v846_v1 }
 0x18f   :  { %1300 = vmatmul.mubr.f32.gmra.mrb[2].mxu0 %v474_v16  ;;  %1557 = vmatprep.subr.bf16.mxu1 %v1556_v3 }
 0x190   :  { %1503 = vmatpush3.bf16.msra.mxu0 %v1500_v10  ;;  %1302 = vmatprep.mubr.f32.mxu0 %v475_v17 }
 0x191   :  { %1505 = vmatprep.subr.bf16.mxu0 %v1504_v18  ;;  %1559 = vmatpush3.bf16.msra.mxu1 %v1556_v3 }
 0x193   :  { %1303 = vmatmul.mubr.f32.gmra.mrb[4].mxu0 %v476_v24 }
 0x194   :  { %1507 = vmatpush3.bf16.msra.mxu0 %v1504_v18  ;;  %1305 = vmatprep.mubr.f32.mxu0 %v477_v25 }
 0x195   :  { %1509 = vmatprep.subr.bf16.mxu0 %v1508_v26 }
 0x197   :  { %1306 = vmatmul.mubr.f32.gmra.mrb[6].mxu0 %v478_v30 }
 0x198   :  { %1511 = vmatpush3.bf16.msra.mxu0 %v1508_v26  ;;  %1308 = vmatprep.mubr.f32.mxu0 %v479_v31 }
 0x199   :  { %1513 = vmatprep.subr.bf16.mxu0 %v1512_v32 }
 0x19b   :  { %1309 = vmatmul.mubr.f32.gmra.mrb[8].mxu0 %v480_v35 }
 0x19c   :  { %1515 = vmatpush3.bf16.msra.mxu0 %v1512_v32  ;;  %1311 = vmatprep.mubr.f32.mxu0 %v481_v36 }
 0x19d   :  { %1517 = vmatprep.subr.bf16.mxu0 %v1516_v37 }
 0x19f   :  { %1312 = vmatmul.mubr.f32.gmra.mrb[10].mxu0 %v482_v40 }
 0x1a0   :  { %1519 = vmatpush3.bf16.msra.mxu0 %v1516_v37  ;;  %1314 = vmatprep.mubr.f32.mxu0 %v483_v41 }
 0x1a1   :  { %1521 = vmatprep.subr.bf16.mxu0 %v1520_v42 }
 0x1a3   :  { %1315 = vmatmul.mubr.f32.gmra.mrb[12].mxu0 %v484_v45 }
 0x1a4   :  { %1523 = vmatpush3.bf16.msra.mxu0 %v1520_v42  ;;  %1317 = vmatprep.mubr.f32.mxu0 %v485_v46 }
 0x1a5   :  { %1525 = vmatprep.subr.bf16.mxu0 %v1524_v47 }
 0x1a7   :  { %1318 = vmatmul.mubr.f32.gmra.mrb[14].mxu0 %v486_v48 }
 0x1a8   :  { %1527 = vmatpush3.bf16.msra.mxu0 %v1524_v47  ;;  %1352 = vmatprep.mubr.f32.mxu0 %v439_v49 }
 0x1ab   :  { %1353 = vmatmul.mubr.f32.vlgmr.msra.gmra.mrb[0].mxu0 %v440_v50 }
 0x1ac   :  { %1355 = vmatprep.mubr.f32.mxu0 %v441_v51 }
 0x1af   :  { %1356 = vmatmul.mubr.f32.gmra.mrb[2].mxu0 %v442_v52 }
 0x1b0   :  { %1358 = vmatprep.mubr.f32.mxu0 %v443_v53  ;;  %v1078_v53 = vld [vmem:[%s1989_s9] ss:$0 sm:$0xff]  ;;  %s1753_s9 = smov [#allocation15]  }
 0x1b1   :  { %s1021_s27 = sshll.u32 %s1753_s9, 4  ;;  %s1022_s27 = int_to_ptr.vmem [resolvable:$true] %s1021_s27 }
 0x1b2   :  { %s1714_s28 = scalar_lea.vmem %s1022_s27, 2048  ;;  %p1719_p5 = scmp.lt.s32.totalorder %s1022_s27, %s1022_s27 }
 0x1b3   :  { %1359 = vmatmul.mubr.f32.gmra.mrb[4].mxu0 %v444_v54  ;;  %p1715_p4 = scmp.ne.s32.totalorder %s1022_s27, %s1714_s28  ;;  %p1720_p6 = scmp.lt.s32.totalorder %s1714_s28, %s1714_s28 }
 0x1b4   :  { %1361 = vmatprep.mubr.f32.mxu0 %v445_v55 }
 0x1b5   :  { %p1721_p7 = por %p1720_p6, %p1719_p5 }
 0x1b7   :  { %1362 = vmatmul.mubr.f32.gmra.mrb[6].mxu0 %v446_v56  ;;  %p1722_p8 = pnand %p1721_p7, %p1715_p4 }
 0x1b8   :  { %1364 = vmatprep.mubr.f32.mxu0 %v447_v57 }
 0x1bb   :  { %1365 = vmatmul.mubr.f32.gmra.mrb[8].mxu0 %v448_v58 }
 0x1bc   :  { %1367 = vmatprep.mubr.f32.mxu0 %v449_v59 }
 0x1bf   :  { %1368 = vmatmul.mubr.f32.gmra.mrb[10].mxu0 %v450_v60 }
 0x1c0   :  { %1370 = vmatprep.mubr.f32.mxu0 %v451_v61 }
 0x1c3   :  { %1371 = vmatmul.mubr.f32.gmra.mrb[12].mxu0 %v452_v62 }
 0x1c4   :  { %1373 = vmatprep.mubr.f32.mxu0 %v453_v63 }
 0x1c7   :  { %1374 = vmatmul.mubr.f32.gmra.mrb[14].mxu0 %v454_v0 }
 0x27e   :  { %v1354_v5 = vpop.f32.mrb[0].mxu0 }
 0x27f   :  { %v801_v6 = vadd.f32 %v1354_v5, %v1077_v4  ;;  %v714_v7 = vpop.f32.mrb[1].mxu0 }
 0x280   :  { %v800_v8 = vadd.f32 %v1077_v4, %v714_v7 }
 0x281   :  { %v817_v11 = vmax.f32 %v801_v6, 0.0 }
 0x282   :  { %v1357_v9 = vpop.f32.mrb[2].mxu0  ;;  %v816_v10 = vmax.f32 %v800_v8, 0.0 }
 0x283   :  { %v803_v12 = vadd.f32 %v1357_v9, %v1077_v4  ;;  %v724_v13 = vpop.f32.mrb[3].mxu0 }
 0x284   :  { %v802_v14 = vadd.f32 %v1077_v4, %v724_v13  ;;  %1408 = vmatprep.mubr.f32.mxu1 %v816_v10 }
 0x285   :  { %1409 = vmatmul.mubr.f32.vlgmr.msra.gmra.mrb[0].mxu1 %v817_v11  ;;  %v819_v17 = vmax.f32 %v803_v12, 0.0 }
 0x286   :  { %v818_v15 = vmax.f32 %v802_v14, 0.0  ;;  %v1360_v16 = vpop.f32.mrb[4].mxu0 }
 0x287   :  { %v805_v18 = vadd.f32 %v1360_v16, %v1077_v4  ;;  %v734_v19 = vpop.f32.mrb[5].mxu0 }
 0x288   :  { %v804_v20 = vadd.f32 %v1077_v4, %v734_v19  ;;  %1411 = vmatprep.mubr.f32.mxu1 %v818_v15 }
 0x289   :  { %1412 = vmatmul.mubr.f32.gmra.mrb[2].mxu1 %v819_v17  ;;  %v821_v23 = vmax.f32 %v805_v18, 0.0 }
 0x28a   :  { %v820_v21 = vmax.f32 %v804_v20, 0.0  ;;  %v1363_v22 = vpop.f32.mrb[6].mxu0 }
 0x28b   :  { %v807_v24 = vadd.f32 %v1363_v22, %v1077_v4  ;;  %v744_v25 = vpop.f32.mrb[7].mxu0 }
 0x28c   :  { %v806_v26 = vadd.f32 %v1077_v4, %v744_v25  ;;  %1414 = vmatprep.mubr.f32.mxu1 %v820_v21 }
 0x28d   :  { %1415 = vmatmul.mubr.f32.gmra.mrb[4].mxu1 %v821_v23  ;;  %v823_v29 = vmax.f32 %v807_v24, 0.0 }
 0x28e   :  { %v822_v27 = vmax.f32 %v806_v26, 0.0  ;;  %v1366_v28 = vpop.f32.mrb[8].mxu0 }
 0x28f   :  { %v809_v30 = vadd.f32 %v1366_v28, %v1077_v4  ;;  %v754_v31 = vpop.f32.mrb[9].mxu0 }
 0x290   :  { %v808_v32 = vadd.f32 %v1077_v4, %v754_v31  ;;  %1417 = vmatprep.mubr.f32.mxu1 %v822_v27 }
 0x291   :  { %1418 = vmatmul.mubr.f32.gmra.mrb[6].mxu1 %v823_v29  ;;  %v825_v35 = vmax.f32 %v809_v30, 0.0 }
 0x292   :  { %v824_v33 = vmax.f32 %v808_v32, 0.0  ;;  %v1369_v34 = vpop.f32.mrb[10].mxu0 }
 0x293   :  { %v811_v36 = vadd.f32 %v1369_v34, %v1077_v4  ;;  %v764_v37 = vpop.f32.mrb[11].mxu0 }
 0x294   :  { %v810_v38 = vadd.f32 %v1077_v4, %v764_v37  ;;  %1420 = vmatprep.mubr.f32.mxu1 %v824_v33 }
 0x295   :  { %1421 = vmatmul.mubr.f32.gmra.mrb[8].mxu1 %v825_v35  ;;  %v827_v41 = vmax.f32 %v811_v36, 0.0 }
 0x296   :  { %v826_v39 = vmax.f32 %v810_v38, 0.0  ;;  %v1372_v40 = vpop.f32.mrb[12].mxu0 }
 0x297   :  { %v813_v42 = vadd.f32 %v1372_v40, %v1077_v4  ;;  %v774_v43 = vpop.f32.mrb[13].mxu0 }
 0x298   :  { %v812_v44 = vadd.f32 %v1077_v4, %v774_v43  ;;  %1423 = vmatprep.mubr.f32.mxu1 %v826_v39 }
 0x299   :  { %1424 = vmatmul.mubr.f32.gmra.mrb[10].mxu1 %v827_v41  ;;  %v829_v47 = vmax.f32 %v813_v42, 0.0 }
 0x29a   :  { %v828_v45 = vmax.f32 %v812_v44, 0.0  ;;  %v1375_v46 = vpop.f32.mrb[14].mxu0 }
 0x29b   :  { %v815_v48 = vadd.f32 %v1375_v46, %v1077_v4  ;;  %v784_v49 = vpop.f32.mrb[15].mxu0 }
 0x29c   :  { %v814_v50 = vadd.f32 %v1077_v4, %v784_v49  ;;  %1426 = vmatprep.mubr.f32.mxu1 %v828_v45 }
 0x29d   :  { %1427 = vmatmul.mubr.f32.gmra.mrb[12].mxu1 %v829_v47  ;;  %v831_v52 = vmax.f32 %v815_v48, 0.0 }
 0x29e   :  { %v830_v51 = vmax.f32 %v814_v50, 0.0 }
 0x2a0   :  { %1429 = vmatprep.mubr.f32.mxu1 %v830_v51 }
 0x2a1   :  { %1430 = vmatmul.mubr.f32.gmra.mrb[14].mxu1 %v831_v52 }
 0x358   :  { %v1410_v54 = vpop.f32.mrb[0].mxu1 }
 0x359   :  { %v927_v55 = vadd.f32 %v1410_v54, %v1078_v53  ;;  %v921_v56 = vpop.f32.mrb[1].mxu1 }
 0x35a   :  { %v922_v57 = vadd.f32 %v1078_v53, %v921_v56 }
 0x35b   :  { %1001 = vst [vmem:[#allocation15 + $0x8] sm:$0xff] %v927_v55 }
 0x35c   :  { %1000 = vst [vmem:[#allocation15] sm:$0xff] %v922_v57  ;;  %v1413_v58 = vpop.f32.mrb[2].mxu1 }
 0x35d   :  { %v937_v59 = vadd.f32 %v1413_v58, %v1078_v53  ;;  %v931_v60 = vpop.f32.mrb[3].mxu1 }
 0x35e   :  { %v932_v61 = vadd.f32 %v1078_v53, %v931_v60 }
 0x35f   :  { %1003 = vst [vmem:[#allocation15 + $0x18] sm:$0xff] %v937_v59 }
 0x360   :  { %1002 = vst [vmem:[#allocation15 + $0x10] sm:$0xff] %v932_v61  ;;  %v1416_v62 = vpop.f32.mrb[4].mxu1 }
 0x361   :  { %v947_v63 = vadd.f32 %v1416_v62, %v1078_v53  ;;  %v941_v0 = vpop.f32.mrb[5].mxu1 }
 0x362   :  { %v942_v1 = vadd.f32 %v1078_v53, %v941_v0 }
 0x363   :  { %1005 = vst [vmem:[#allocation15 + $0x28] sm:$0xff] %v947_v63 }
 0x364   :  { %1004 = vst [vmem:[#allocation15 + $0x20] sm:$0xff] %v942_v1  ;;  %v1419_v2 = vpop.f32.mrb[6].mxu1 }
 0x365   :  { %v957_v3 = vadd.f32 %v1419_v2, %v1078_v53  ;;  %v951_v4 = vpop.f32.mrb[7].mxu1 }
 0x366   :  { %v952_v5 = vadd.f32 %v1078_v53, %v951_v4 }
 0x367   :  { %1007 = vst [vmem:[#allocation15 + $0x38] sm:$0xff] %v957_v3 }
 0x368   :  { %1006 = vst [vmem:[#allocation15 + $0x30] sm:$0xff] %v952_v5  ;;  %v1422_v6 = vpop.f32.mrb[8].mxu1 }
 0x369   :  { %v967_v7 = vadd.f32 %v1422_v6, %v1078_v53  ;;  %v961_v8 = vpop.f32.mrb[9].mxu1 }
 0x36a   :  { %v962_v9 = vadd.f32 %v1078_v53, %v961_v8 }
 0x36b   :  { %1009 = vst [vmem:[#allocation15 + $0x48] sm:$0xff] %v967_v7 }
 0x36c   :  { %1008 = vst [vmem:[#allocation15 + $0x40] sm:$0xff] %v962_v9  ;;  %v1425_v10 = vpop.f32.mrb[10].mxu1 }
 0x36d   :  { %v977_v11 = vadd.f32 %v1425_v10, %v1078_v53  ;;  %v971_v12 = vpop.f32.mrb[11].mxu1 }
 0x36e   :  { %v972_v13 = vadd.f32 %v1078_v53, %v971_v12 }
 0x36f   :  { %1011 = vst [vmem:[#allocation15 + $0x58] sm:$0xff] %v977_v11 }
 0x370   :  { %1010 = vst [vmem:[#allocation15 + $0x50] sm:$0xff] %v972_v13  ;;  %v1428_v14 = vpop.f32.mrb[12].mxu1 }
 0x371   :  { %v987_v15 = vadd.f32 %v1428_v14, %v1078_v53  ;;  %v981_v16 = vpop.f32.mrb[13].mxu1 }
 0x372   :  { %v982_v17 = vadd.f32 %v1078_v53, %v981_v16 }
 0x373   :  { %1013 = vst [vmem:[#allocation15 + $0x68] sm:$0xff] %v987_v15 }
 0x374   :  { %1012 = vst [vmem:[#allocation15 + $0x60] sm:$0xff] %v982_v17  ;;  %v1431_v18 = vpop.f32.mrb[14].mxu1 }
 0x375   :  { %v997_v19 = vadd.f32 %v1431_v18, %v1078_v53  ;;  %v991_v20 = vpop.f32.mrb[15].mxu1 }
 0x376   :  { %v992_v21 = vadd.f32 %v1078_v53, %v991_v20 }
 0x377   :  { %1015 = vst [vmem:[#allocation15 + $0x78] sm:$0xff] %v997_v19 }
 0x378   :  { %1014 = vst [vmem:[#allocation15 + $0x70] sm:$0xff] %v992_v21 }
 0x379   :  { %1725 = shalt.err (!%p1722_p8)
}
 0x37a   :  { %s1726_s11 = scalar_lea.hbm %s1990_s10, 2048 }
 0x37b   :  { %p1727_p9 = scmp.ne.s32.totalorder %s1990_s10, %s1726_s11  ;;  %p1730_p10 = scmp.lt.u32.totalorder %s1726_s11, %s1990_s10 }
 0x37d   :  { %p1732_p11 = pnand %p1730_p10, %p1727_p9 }
 0x37f   :  { %1735 = shalt.err (!%p1732_p11)
}
 0x380   :  { %1027 = dma.vmem_to_hbm [thread:$0]  %s1022_s27, 2048, %s1990_s10, [#allocation8], %s1746_s25, %s1746_s25, %s1747_s26  }
 0x381   :  { %1742 = dma.done.wait [#allocation8], 2048  }
 0x382   :  { %1743 = vsyncadd [#allocation8], 4294965248 }
 0x383   :  { %1031 = vsyncpa [#allocation7], 1 }
 0x384   :  { %1032 = vsyncpa [#allocation10], 1 }
 0x385   :  { %1033 = vsyncpa [#allocation13], 1 }
 0x386   :  { %1034 = vsyncpa [#allocation8], 1 }

</bundles_post_ra>
